<compile_context>
chip_gen: v6e
topology: v6e:2x2x1
jax: 0.10.0
libtpu: 0.0.40
codegen_flags: <defaults>
</compile_context>

<pallas_src>
import math
import functools

import jax
import jax.numpy as jnp
from jax.experimental import pallas as pl
from jax.experimental.pallas import tpu as pltpu


def _round_up(a, b):
    return ((a + b - 1) // b) * b


def _arc_margin_kernel(x_ref, w_ref, label_ref, out_ref, *,
                       s, cos_m, sin_m, th, mm, easy_margin, sub):
    # x tile: (TB, IN) bf16, already L2-normalized in the wrapper.
    x_n = x_ref[...]

    # Weight tile: (SUB, IN, TN) bf16; rows L2-normalized in the wrapper.
    # Running max over sub keeps the (TB, TN) cosine lane-dense (pure VPU max).
    cosine = jnp.dot(x_n, w_ref[0], preferred_element_type=jnp.float32)
    for sidx in range(1, sub):
        cosine = jnp.maximum(
            cosine,
            jnp.dot(x_n, w_ref[sidx], preferred_element_type=jnp.float32))

    # --- margin epilogue on the target column only -------------------------
    tn = out_ref.shape[1]
    # class grid axis is program_id(0) (grid = (class_tiles, batch_tiles))
    label_local = label_ref[...] - pl.program_id(0) * tn          # (TB,1) i32
    col = jax.lax.broadcasted_iota(jnp.int32, cosine.shape, 1)    # loop-invariant
    is_target = col == label_local                                # (TB,TN) bool

    # target-class cosine per row via masked lane reduce (XLU slot)
    cos_t = jnp.sum(jnp.where(is_target, cosine, 0.0), axis=1, keepdims=True)
    sine_t = jnp.sqrt(jnp.maximum(1.0 - cos_t * cos_t, 0.0))      # (TB,1)
    phi_t = cos_t * cos_m - sine_t * sin_m
    if easy_margin:
        phi_t = jnp.where(cos_t > 0, phi_t, cos_t)
    else:
        phi_t = jnp.where(cos_t - th > 0, phi_t, cos_t - mm)

    # single full-tile select + scale
    out_ref[...] = (jnp.where(is_target, phi_t, cosine) * s).astype(out_ref.dtype)


def arc_margin_forward(x, weight, label, *, s=30.0, m=0.7, sub=1,
                       easy_margin=False, block_b=256, block_n=1024):
    """ArcMarginProduct.forward.  x:(B,IN) f32, weight:(OUT*SUB,IN), label:(B,) int."""
    B, in_f = x.shape
    out_sub, in_f2 = weight.shape
    assert in_f == in_f2 and out_sub % sub == 0
    out_f = out_sub // sub

    # ---- one-time weight prep (plain JAX, outside the grid loop) ------------
    # F.normalize(weight, dim=1, eps=1e-12) in f32.
    w32 = weight.astype(jnp.float32)
    w_norm = jnp.sqrt(jnp.sum(w32 * w32, axis=1, keepdims=True))
    w_n = w32 / jnp.maximum(w_norm, 1e-12)
    # PyTorch row j = class j//sub, sub-index j%sub  ->  (SUB, IN, OUT)
    w_n = w_n.reshape(out_f, sub, in_f).transpose(1, 2, 0)

    # class axis: pad lane-dense, tile with block_n (multiple of 128)
    assert block_n % 128 == 0
    block_n = max(128, min(block_n, _round_up(out_f, 128)))
    out_pad = _round_up(out_f, block_n)
    w_n = jnp.pad(w_n, ((0, 0), (0, 0), (0, out_pad - out_f))).astype(jnp.bfloat16)

    # batch axis: multiple-of-8 tiles, up to the 256-wide MXU of v6e/v7x
    assert block_b % 8 == 0
    block_b = max(8, min(block_b, _round_up(B, 8)))
    b_pad = _round_up(B, block_b)

    # ---- one-time x prep: F.normalize(x, dim=1, eps=1e-12), cast bf16 -------
    x32 = x.astype(jnp.float32)
    x_norm = jnp.sqrt(jnp.sum(x32 * x32, axis=1, keepdims=True))
    x_n = (x32 / jnp.maximum(x_norm, 1e-12)).astype(jnp.bfloat16)
    x_p = jnp.pad(x_n, ((0, b_pad - B), (0, 0)))
    label_p = jnp.pad(label.reshape(B).astype(jnp.int32), (0, b_pad - B),
                      constant_values=-1).reshape(b_pad, 1)

    kernel = functools.partial(
        _arc_margin_kernel,
        s=s, cos_m=math.cos(m), sin_m=math.sin(m),
        th=math.cos(math.pi - m), mm=math.sin(math.pi - m) * m,
        easy_margin=easy_margin, sub=sub)

    # grid = (class_tiles, batch_tiles): batch innermost -> weight tile stays
    # resident in VMEM across the whole batch, x / out tiles stream.
    grid = (out_pad // block_n, b_pad // block_b)

    # VMEM budget (double-buffered tiles + headroom), capped for v7x (64 MiB)
    w_tile_bytes = sub * in_f * block_n * 2
    x_tile_bytes = block_b * in_f * 2
    out_tile_bytes = block_b * block_n * 4
    lbl_tile_bytes = block_b * 128 * 4
    vmem_est = 2 * (w_tile_bytes + x_tile_bytes + out_tile_bytes + lbl_tile_bytes)
    vmem_limit = int(min(max(2 * vmem_est + (4 << 20), 32 << 20), 64 << 20))

    out = pl.pallas_call(
        kernel,
        out_shape=jax.ShapeDtypeStruct((b_pad, out_pad), jnp.float32),
        grid_spec=pl.GridSpec(
            grid=grid,
            in_specs=[
                pl.BlockSpec((block_b, in_f), lambda j, i: (i, 0)),          # x (streams)
                pl.BlockSpec((sub, in_f, block_n), lambda j, i: (0, 0, j)),  # weight (resident)
                pl.BlockSpec((block_b, 1), lambda j, i: (i, 0)),             # labels
            ],
            out_specs=pl.BlockSpec((block_b, block_n), lambda j, i: (i, j)),
        ),
        compiler_params=pltpu.CompilerParams(
            dimension_semantics=("parallel", "parallel"),
            vmem_limit_bytes=vmem_limit),
    )(x_p, w_n, label_p)

    return out[:B, :out_f]


def _reference(x, weight, label, *, s=30.0, m=0.7, sub=1, easy_margin=False):
    # pure-JAX f32 reference (mirrors the PyTorch module exactly)
    x_n = x / jnp.maximum(jnp.linalg.norm(x, axis=1, keepdims=True), 1e-12)
    w_n = weight / jnp.maximum(jnp.linalg.norm(weight, axis=1, keepdims=True), 1e-12)
    cosine = x_n @ w_n.T
    out_f = weight.shape[0] // sub
    if sub > 1:
        cosine = jnp.max(cosine.reshape(-1, out_f, sub), axis=2)
    sine = jnp.sqrt(jnp.maximum(1.0 - cosine ** 2, 0.0))
    phi = cosine * math.cos(m) - sine * math.sin(m)
    if easy_margin:
        phi = jnp.where(cosine > 0, phi, cosine)
    else:
        phi = jnp.where(cosine - math.cos(math.pi - m) > 0, phi,
                        cosine - math.sin(math.pi - m) * m)
    one_hot = jax.nn.one_hot(label, out_f, dtype=jnp.float32)
    return (one_hot * phi + (1.0 - one_hot) * cosine) * s


if __name__ == "__main__":
    key = jax.random.PRNGKey(0)

    # Test 1: module defaults (in=128, out=200, sub=1); small block sizes so
    # both grid axes (class tiles x batch tiles) are actually exercised.
    B, IN, OUT, SUB = 16, 128, 200, 1
    kx, kw, kl = jax.random.split(key, 3)
    bound = math.sqrt(6.0 / (IN + OUT * SUB))          # xavier_uniform_
    weight = jax.random.uniform(kw, (OUT * SUB, IN), jnp.float32, -bound, bound)
    x = jax.random.normal(kx, (B, IN), jnp.float32)
    label = jax.random.randint(kl, (B,), 0, OUT, jnp.int32)

    out = jax.block_until_ready(
        arc_margin_forward(x, weight, label, s=30.0, m=0.7, sub=SUB,
                           easy_margin=False, block_b=8, block_n=128))
    ref = _reference(x, weight, label, s=30.0, m=0.7, sub=SUB, easy_margin=False)
    assert out.shape == (B, OUT)
    # bf16 MXU operands -> loosened tolerance vs. the f32 reference
    assert jnp.allclose(out, ref, atol=2e-1, rtol=2e-2)

    # Test 2: sub > 1 path (running-max over sub slices), default block sizes.
    B2, IN2, OUT2, SUB2 = 8, 128, 64, 2
    kx2, kw2, kl2 = jax.random.split(jax.random.PRNGKey(1), 3)
    bound2 = math.sqrt(6.0 / (IN2 + OUT2 * SUB2))
    weight2 = jax.random.uniform(kw2, (OUT2 * SUB2, IN2), jnp.float32, -bound2, bound2)
    x2 = jax.random.normal(kx2, (B2, IN2), jnp.float32)
    label2 = jax.random.randint(kl2, (B2,), 0, OUT2, jnp.int32)

    out2 = jax.block_until_ready(
        arc_margin_forward(x2, weight2, label2, s=30.0, m=0.7, sub=SUB2,
                           easy_margin=False))
    ref2 = _reference(x2, weight2, label2, s=30.0, m=0.7, sub=SUB2, easy_margin=False)
    assert out2.shape == (B2, OUT2)
    assert jnp.allclose(out2, ref2, atol=2e-1, rtol=2e-2)

    # Test 3: easy_margin branch.
    out3 = jax.block_until_ready(
        arc_margin_forward(x, weight, label, s=30.0, m=0.7, sub=SUB,
                           easy_margin=True))
    ref3 = _reference(x, weight, label, s=30.0, m=0.7, sub=SUB, easy_margin=True)
    assert jnp.allclose(out3, ref3, atol=2e-1, rtol=2e-2)

    print("KERNEL_OK")
</pallas_src>

<mosaic_0001>
module attributes {stable_mosaic.version = 11 : i64} {
  func.func @_arc_margin_kernel(%arg0: i32, %arg1: i32, %arg2: memref<8x128xbf16, #tpu.memory_space<vmem>>, %arg3: memref<1x128x128xbf16, #tpu.memory_space<vmem>>, %arg4: memref<8x1xi32, #tpu.memory_space<vmem>>, %arg5: memref<8x128xf32, #tpu.memory_space<vmem>>) attributes {dimension_semantics = [#tpu.dimension_semantics<parallel>, #tpu.dimension_semantics<parallel>], iteration_bounds = array<i64: 2, 2>, scalar_prefetch = 0 : i64, scratch_operands = 0 : i64, tpu.core_type = #tpu.core_type<tc>, window_params = [{transform_indices = @transform_0, window_bounds = array<i64: 8, 128>}, {transform_indices = @transform_1, window_bounds = array<i64: 1, 128, 128>}, {transform_indices = @transform_2, window_bounds = array<i64: 8, 1>}, {transform_indices = @transform_3, window_bounds = array<i64: 8, 128>}]} {
    %c0 = arith.constant 0 : index
    %c0_0 = arith.constant 0 : index
    %0 = vector.load %arg2[%c0, %c0_0] : memref<8x128xbf16, #tpu.memory_space<vmem>>, vector<8x128xbf16>
    %c0_1 = arith.constant 0 : index
    %c0_2 = arith.constant 0 : index
    %c0_3 = arith.constant 0 : index
    %1 = vector.load %arg3[%c0_1, %c0_2, %c0_3] : memref<1x128x128xbf16, #tpu.memory_space<vmem>>, vector<1x128x128xbf16>
    %2 = vector.shape_cast %1 : vector<1x128x128xbf16> to vector<128x128xbf16>
    %cst = arith.constant dense<0.000000e+00> : vector<8x128xf32>
    %3 = tpu.matmul %0, %2, %cst {dimension_numbers = #tpu.dot_dimension_numbers<[1], [0], [0], [1], [0, 0, 1, 1], [], []>} : vector<8x128xbf16>, vector<128x128xbf16>, vector<8x128xf32> -> vector<8x128xf32>
    %c0_4 = arith.constant 0 : index
    %c0_5 = arith.constant 0 : index
    %4 = vector.load %arg4[%c0_4, %c0_5] : memref<8x1xi32, #tpu.memory_space<vmem>>, vector<8x1xi32>
    %c128_i32 = arith.constant 128 : i32
    %5 = arith.muli %arg0, %c128_i32 : i32
    %6 = vector.broadcast %5 : i32 to vector<8x1xi32>
    %7 = arith.subi %4, %6 : vector<8x1xi32>
    %8 = tpu.iota {dimensions = array<i32: 1>} : vector<8x128xi32>
    %9 = vector.broadcast %7 : vector<8x1xi32> to vector<8x128xi32>
    %10 = arith.cmpi eq, %8, %9 : vector<8x128xi32>
    %cst_6 = arith.constant 0.000000e+00 : f32
    %11 = vector.broadcast %cst_6 : f32 to vector<8x128xf32>
    %12 = arith.select %10, %3, %11 : vector<8x128xi1>, vector<8x128xf32>
    %cst_7 = arith.constant dense<0.000000e+00> : vector<8xf32>
    %13 = vector.multi_reduction <add>, %12, %cst_7 [1] : vector<8x128xf32> to vector<8xf32>
    %14 = vector.shape_cast %13 : vector<8xf32> to vector<8x1xf32>
    %15 = arith.mulf %14, %14 : vector<8x1xf32>
    %cst_8 = arith.constant 1.000000e+00 : f32
    %16 = vector.broadcast %cst_8 : f32 to vector<8x1xf32>
    %17 = arith.subf %16, %15 : vector<8x1xf32>
    %cst_9 = arith.constant 0.000000e+00 : f32
    %18 = vector.broadcast %cst_9 : f32 to vector<8x1xf32>
    %19 = arith.maximumf %17, %18 : vector<8x1xf32>
    %20 = math.sqrt %19 : vector<8x1xf32>
    %cst_10 = arith.constant 0.764842212 : f32
    %21 = vector.broadcast %cst_10 : f32 to vector<8x1xf32>
    %22 = arith.mulf %14, %21 : vector<8x1xf32>
    %cst_11 = arith.constant 0.644217669 : f32
    %23 = vector.broadcast %cst_11 : f32 to vector<8x1xf32>
    %24 = arith.mulf %20, %23 : vector<8x1xf32>
    %25 = arith.subf %22, %24 : vector<8x1xf32>
    %cst_12 = arith.constant -0.764842212 : f32
    %26 = vector.broadcast %cst_12 : f32 to vector<8x1xf32>
    %27 = arith.subf %14, %26 : vector<8x1xf32>
    %cst_13 = arith.constant 0.000000e+00 : f32
    %28 = vector.broadcast %cst_13 : f32 to vector<8x1xf32>
    %29 = arith.cmpf ogt, %27, %28 : vector<8x1xf32>
    %cst_14 = arith.constant 0.450952381 : f32
    %30 = vector.broadcast %cst_14 : f32 to vector<8x1xf32>
    %31 = arith.subf %14, %30 : vector<8x1xf32>
    %32 = arith.select %29, %25, %31 : vector<8x1xi1>, vector<8x1xf32>
    %33 = vector.shape_cast %32 : vector<8x1xf32> to vector<8x1xf32>
    %34 = vector.broadcast %33 : vector<8x1xf32> to vector<8x128xf32>
    %35 = arith.select %10, %34, %3 : vector<8x128xi1>, vector<8x128xf32>
    %cst_15 = arith.constant 3.000000e+01 : f32
    %36 = vector.broadcast %cst_15 : f32 to vector<8x128xf32>
    %37 = arith.mulf %35, %36 : vector<8x128xf32>
    %c0_16 = arith.constant 0 : index
    %c0_17 = arith.constant 0 : index
    %38 = vector.load %arg5[%c0_16, %c0_17] : memref<8x128xf32, #tpu.memory_space<vmem>>, vector<8x128xf32>
    tpu.vector_store %arg5[%c0_16, %c0_17], %37 {strides = array<i32>} : memref<8x128xf32, #tpu.memory_space<vmem>>, vector<8x128xf32>,
    return
  }
  func.func @transform_0(%arg0: i32, %arg1: i32) -> (i32, i32) {
    %c0_i32 = arith.constant 0 : i32
    %c0_i32_0 = arith.constant 0 : i32
    return %arg1, %c0_i32 : i32, i32
  }
  func.func @transform_1(%arg0: i32, %arg1: i32) -> (i32, i32, i32) {
    %c0_i32 = arith.constant 0 : i32
    %c0_i32_0 = arith.constant 0 : i32
    %c0_i32_1 = arith.constant 0 : i32
    return %c0_i32, %c0_i32_0, %arg0 : i32, i32, i32
  }
  func.func @transform_2(%arg0: i32, %arg1: i32) -> (i32, i32) {
    %c0_i32 = arith.constant 0 : i32
    %c0_i32_0 = arith.constant 0 : i32
    return %arg1, %c0_i32 : i32, i32
  }
  func.func @transform_3(%arg0: i32, %arg1: i32) -> (i32, i32) {
    %c0_i32 = arith.constant 0 : i32
    return %arg1, %arg0 : i32, i32
  }
}

</mosaic_0001>

<bundles_post_ra>
// kernel: tpu_custom_call.1
= control target key start
LH: loop header
LB: loop body
LE: loop exit
PB: predicated region body
PF: predicated region fallthrough
CT: control target
= control target key end

     0   :  { %8 = vsyncpa [#allocation3], 0  ;;  %s1052_s0 = inlined_call_operand.vmem [shape: bf16[16,128], index: 0, kind: input, shape index: {}]   ;;  %s1053_s1 = inlined_call_operand.hbm [shape: bf16[1,128,256], index: 1, kind: input, shape index: {}]   ;;  %s1054_s2 = inlined_call_operand.vmem [shape: s32[16,1], index: 2, kind: input, shape index: {}]   ;;  %s1055_s3 = inlined_call_operand.hbm [shape: f32[16,256], index: 3, kind: output, shape index: {}]  }
   0x1   :  { %10 = vsyncpa [#allocation3 + $0x1], 0 }
   0x2   :  { %11 = vsyncpa [#allocation4], 0 }
   0x3   :  { %13 = vsyncpa [#allocation4 + $0x1], 0  ;;  %s851_s12 = smov 0   ;;  %s853_s13 = smov 0  }
   0x4   :  { %s855_s14 = smov 0   ;;  %s857_s15 = smov 0  }
   0x5   :  { %s859_s16 = smov 0   ;;  %s861_s17 = smov 0  }
   0x6   :  { %s863_s18 = smov 0   ;;  %s865_s19 = smov 0  }
   0x7   :  { %s867_s20 = smov 0   ;;  %s869_s21 = smov 0  }
   0x8   :  { %s871_s22 = smov 0  }
   0x9 LB: > { %1060 = sst [smem:[#allocation8_spill]] %s813_s20  ;;  %s498_s23 = sadd.s32 4294967295, %s821_s22   ;;  %s821_s22 = sphi %s871_s22, %s19_s22   ;;  %s817_s21 = sphi %s869_s21, %s1072_s21   ;;  %s813_s20 = sphi %s867_s20, %s1071_s20   ;;  %s809_s19 = sphi %s865_s19, %s1070_s19   ;;  %s805_s18 = sphi %s863_s18, %s1069_s18   ;;  %s801_s17 = sphi %s861_s17, %s1078_s17   ;;  %s797_s16 = sphi %s859_s16, %s1077_s16   ;;  %s793_s15 = sphi %s857_s15, %s1076_s15   ;;  %s789_s14 = sphi %s855_s14, %s1075_s14   ;;  %s785_s13 = sphi %s853_s13, %s1074_s13   ;;  %s781_s12 = sphi %s851_s12, %s1073_s12  }
   0xa   : > { %1061 = sst [smem:[#allocation9_spill]] %s817_s21  ;;  %s499_s24 = sadd.s32 4294967294, %s821_s22  }
   0xb   : > { %s28_s25 = sadd.s32 1, %s813_s20  ;;  %s31_s26 = sadd.s32 1, %s817_s21 }
   0xc   : > { %p29_p0 = scmp.ge.s32.totalorder %s28_s25, 2  ;;  %s64_s27 = sadd.s32 1, %s801_s17 }
   0xd   : > { %p71_p1 = scmp.ne.s32.totalorder %s801_s17, %s797_s16  ;;  %p72_p2 = scmp.eq.s32.totalorder %s821_s22, 0 }
   0xe   : > { %s1080_s25 = smov (%p29_p0, %s28_s25), 0  ;;  %s1082_s26 = smov (!%p29_p0, %s31_s26), %s817_s21 }
   0xf   : > { %1062 = sst [smem:[#allocation10_spill]] %s1080_s25  ;;  %p915_p3 = por %p72_p2, %p71_p1 }
  0x10   : > { %p77_p4 = scmp.ne.s32.totalorder %s797_s16, %s793_s15  ;;  %p33_p5 = scmp.ge.s32.totalorder %s1082_s26, 2 }
  0x11   : > { %p78_p6 = scmp.eq.s32.totalorder %s498_s23, 0  ;;  %s113_s29 = ssub.s32 %s813_s20, %s1080_s25 }
  0x12   : > { %s118_s30 = sadd.s32 1, %s789_s14  ;;  %s1084_s26 = smov (%p33_p5, %s1082_s26), 0 }
  0x13   : > { %1064 = sst [smem:[#allocation11_spill]] %s1084_s26  ;;  %p925_p7 = por %p78_p6, %p77_p4 }
  0x14   : > { %p128_p8 = scmp.ne.s32.totalorder %s789_s14, %s785_s13  ;;  %s61_s5 = ssub.s32 %s817_s21, %s1084_s26 }
  0x15   : > { %p129_p9 = scmp.eq.s32.totalorder %s498_s23, 3  ;;  %p62_p10 = scmp.eq.s32.totalorder %s61_s5, 0 }
  0x16   : > { %s115_s6 = sor.u32 %s113_s29, %s61_s5  ;;  %p134_p13 = scmp.ne.s32.totalorder %s785_s13, %s781_s12 }
  0x17   : > { %p116_p11 = scmp.eq.s32.totalorder %s115_s6, 0  ;;  %p933_p12 = por %p129_p9, %p128_p8 }
  0x18   : > { %s938_s8 = scalar_select %p62_p10, %s801_s17, %s64_s27  }
  0x19   : > { %s941_s9 = scalar_select %p116_p11, %s789_s14, %s118_s30  }
  0x1a   : > { %p135_p0 = scmp.eq.s32.totalorder %s499_s24, 3  ;;  %p566_p1 = scmp.lt.s32.totalorder %s821_s22, 4 }
  0x1b   : > { %s162_s11 = sand.u32 1, %s801_s17   ;;  %s503_s23 = sshll.u32 %s817_s21, 6 }
  0x1c   : > { %p946_p2 = por %p135_p0, %p134_p13  ;;  %s502_s15 = sshll.u32 %s162_s11, 6 }
  0x1d   : > { %s171_s6 = scalar_lea.hbm %s1053_s1, %s503_s23  ;;  %s166_s26 = scalar_lea.vmem [#allocation2], %s502_s15 }
  0x1e   : > { %s172_s25 = sshll.u32 %s166_s26, 4  ;;  %p957_p4 = pnand %p566_p1, %p915_p3  ;;  %s173_s25 = int_to_ptr.vmem [resolvable:$true] %s172_s25 }
  0x1f   : > { %s163_s24 = scalar_lea.sflag [#allocation3], %s162_s11  ;;  %s686_s30 = scalar_lea.vmem %s173_s25, 1024 }
  0x20   : > { %p675_p5 = pneg %p957_p4  ;;  %p687_p6 = scmp.ne.s32.totalorder %s173_s25, %s686_s30 }
  0x21   : > { %s823_s21 = smov [#allocation2]  }
  0x22   : > { %p689_p8 = pnand %p687_p6, %p675_p5  ;;  %s691_s20 = sshll.u32 %s823_s21, 4  ;;  %s692_s20 = int_to_ptr.vmem [resolvable:$false] %s691_s20 }
  0x23   : > { %s693_s23 = scalar_lea.vmem %s692_s20, 2048  ;;  %p694_p10 = scmp.lt.s32.totalorder %s173_s25, %s692_s20 }
  0x24   : > { %p690_p9 = pneg %p689_p8  ;;  %p695_p11 = scmp.lt.s32.totalorder %s693_s23, %s686_s30 }
  0x26   : > { %p696_p13 = por %p695_p11, %p694_p10 }
  0x28   : > { %p697_p0 = pnand %p696_p13, %p690_p9 }
  0x2a   : > { %700 = shalt.err (!%p697_p0)
}
  0x2b   : > { %s824_s26 = smov 128   ;;  %s825_s28 = smov 64  }
  0x2c   : > { %s826_s11 = smov 4   ;;  %p504_p3 = scmp.ge.s32.totalorder %s821_s22, 1 }
  0x2d   : > { %561 = dma.hbm_to_vmem [thread:$0]  (!%p957_p4), %s171_s6, 1024, %s173_s25, %s163_s24, %s824_s26, %s825_s28, %s826_s11  }
  0x2e   : > { %p187_p1 = scmp.lt.s32.totalorder %s821_s22, 5 }
  0x30   : > { %p188_p5 = pnand %p504_p3, %p187_p1 }
  0x31   : > { %s193_s21 = sand.u32 (!%p188_p5), 1, %s797_s16  }
  0x32   : > { %191 = sbr.rel (%p188_p5) target bundleno = 466 (0x1d2), region = 32  ;;  %s505_s20 = sshll.u32 (!%p188_p5), %s193_s21, 6 }
  0x33   : > { %s194_s15 = scalar_lea.sflag (!%p188_p5), [#allocation3], %s193_s21  ;;  %s968_s29 = scalar_lea.vmem (!%p188_p5), [#allocation2], %s505_s20 }
  0x37   : > { %772 = dma.done.wait (%p925_p7), %s194_s15, 1024  }
  0x38   : > { %774 = vsyncadd (%p925_p7), %s194_s15, 4294966272  ;;  %v827_v0 = vmov 0.0   ;;  %vm828_vm0 = vmmov 0   ;;  %v829_v1 = vmov 0   ;;  %p228_p4 = scmp.lt.s32.totalorder %s805_s18, 1  ;;  %v663_v2 = vld [vmem:[%s968_s29 + $0x38] sm:$0xff]   ;;  %v346_v14 = vlaneseq }
  0x39   : > { %534 = vmatprep.subr.bf16.mxu0 %v827_v0  ;;  %550 = vmatprep.mubr.msk.bf16.mxu0 %vm828_vm0, %v827_v0  ;;  %v664_v3 = vld [vmem:[%s968_s29 + $0x30] sm:$0xff]   ;;  %s517_s5 = sshll.u32 %s809_s19, 7  ;;  %v665_v4 = vld [vmem:[%s968_s29 + $0x28] sm:$0xff]   ;;  %v666_v8 = vld [vmem:[%s968_s29 + $0x20] sm:$0xff]   ;;  %s225_s11 = sand.u32 1, %s785_s13  }
  0x3a   : > { %662 = vset.pattern.permute.xlu0 %v829_v1  ;;  %s977_s25 = scalar_select %p228_p4, %s805_s18, 1  ;;  %535 = vmatpush3.bf16.msra.mxu0 %v663_v2  ;;  %v344_v5 = vstv %s517_s5  ;;  %v667_v9 = vld [vmem:[%s968_s29 + $0x18] sm:$0xff]   ;;  %v668_v10 = vld [vmem:[%s968_s29 + $0x10] sm:$0xff]   ;;  %v669_v11 = vld [vmem:[%s968_s29 + $0x8] sm:$0xff]   ;;  %v347_v15 = vand.u32 127, %v346_v14 }
  0x3b   : > { %536 = vmatprep.subr.bf16.mxu0 %v827_v0  ;;  %v670_v12 = vld [vmem:[%s968_s29] sm:$0xff]   ;;  %s506_s21 = sshll.u32 %s225_s11, 3  ;;  %s521_s20 = sshll.u32 %s805_s18, 1 }
  0x3c   : > { %s508_s4 = sshll.u32 %s977_s25, 3  ;;  %s507_s30 = sshll.u32 %s977_s25, 2 }
  0x3d   : > { %s235_s24 = scalar_lea.vmem %s1054_s2, %s508_s4  ;;  %s231_s28 = scalar_lea.vmem %s1052_s0, %s507_s30 }
  0x3e   : > { %537 = vmatpush3.bf16.msra.mxu0 %v664_v3  ;;  %v342_v6 = vld [vmem:[%s235_s24] sm:$0xff]  ;;  %s387_s15 = sadd.s32 %s809_s19, %s521_s20  ;;  %s227_s25 = scalar_lea.vmem [#allocation5], %s506_s21 }
  0x3f   : > { %538 = vmatprep.subr.bf16.mxu0 %v827_v0  ;;  %v345_v7 = vsub.s32 %v342_v6, %v344_v5  ;;  %v237_v13 = vld [vmem:[%s231_s28] sm:$0xf]  ;;  %s522_s29 = sshll.u32 %s387_s15, 7  ;;  %s391_s4 = sshll.u32 %s227_s25, 4  ;;  %s392_s4 = int_to_ptr.vmem [resolvable:$true] %s391_s4 }
  0x40   : > { %s389_s6 = scalar_lea.hbm %s1055_s3, %s522_s29  ;;  %s376_s27 = scalar_lea.sflag [#allocation4], %s225_s11 }
  0x41   : > { %349 = vperm.xlu0 %662, %v345_v7   ;;  %s701_s24 = scalar_lea.vmem %s392_s4, 128  ;;  %s830_s19 = smov [#allocation5]  }
  0x42   : > { %539 = vmatpush3.bf16.msra.mxu0 %v665_v4  ;;  %p702_p7 = scmp.ne.s32.totalorder %s392_s4, %s701_s24  ;;  %s705_s30 = sshll.u32 %s830_s19, 4  ;;  %s706_s30 = int_to_ptr.vmem [resolvable:$false] %s705_s30 }
  0x43   : > { %540 = vmatprep.subr.bf16.mxu0 %v827_v0  ;;  %s707_s23 = scalar_lea.vmem %s706_s30, 256  ;;  %p708_p9 = scmp.lt.s32.totalorder %s392_s4, %s706_s30 }
  0x44   : > { %p703_p6 = pnand %p702_p7, %p933_p12  ;;  %p709_p10 = scmp.lt.s32.totalorder %s707_s23, %s701_s24 }
  0x46   : > { %541 = vmatpush3.bf16.msra.mxu0 %v666_v8  ;;  %p704_p8 = pneg %p703_p6  ;;  %p710_p11 = por %p709_p10, %p708_p9 }
  0x47   : > { %542 = vmatprep.subr.bf16.mxu0 %v827_v0 }
  0x48   : > { %p711_p13 = pnand %p710_p11, %p704_p8 }
  0x4a   : > { %543 = vmatpush3.bf16.msra.mxu0 %v667_v9 }
  0x4b   : > { %544 = vmatprep.subr.bf16.mxu0 %v827_v0 }
  0x4e   : > { %545 = vmatpush3.bf16.msra.mxu0 %v668_v10 }
  0x4f   : > { %546 = vmatprep.subr.bf16.mxu0 %v827_v0 }
  0x52   : > { %547 = vmatpush3.bf16.msra.mxu0 %v669_v11 }
  0x53   : > { %548 = vmatprep.subr.bf16.mxu0 %v827_v0 }
  0x56   : > { %549 = vmatpush3.bf16.msra.mxu0 %v670_v12 }
  0x59   : > { %551 = vmatmul.mubr.bf16.vlgmr.msra.gmra.mxu0 %v237_v13 }
  0xbc   : > { %v350_v16 = vpop.permute.xlu0 %349 }
  0xbd   : > { %vm351_vm1 = vcmp.eq.s32.totalorder %v347_v15, %v350_v16 }
 0x119   : > { %v336_v17 = vpop.f32.mrf.mxu0 }
 0x11a   : > { %v352_v18 = vsel %vm351_vm1, %v336_v17, 0.0 }
 0x11b   : > { %353 = vadd.xlane.f32.xlu0 %v352_v18  ;;  %v552_v19 = vpop.f32.mrf.mxu0 }
 0x11d   : > { %v339_v20 = vpop.f32.mrf.mxu0 }
 0x11f   : > { %v553_v21 = vpop.f32.mrf.mxu0 }
 0x1a4   : > { %v354_v22 = vpop.xlane.xlu0 %353 }
 0x1a5   : > { %v355_v23 = vmul.f32 %v354_v22, %v354_v22  ;;  %v518_v31 = vadd.f32 0.7648422, %v354_v22  ;;  %v365_v32 = vmul.f32 0.7648422, %v354_v22  ;;  %v519_v35 = vadd.f32 -0.45095238, %v354_v22 }
 0x1a7   : > { %v356_v24 = vsub.f32 1.0, %v355_v23  ;;  %vm369_vm4 = vcmp.gt.f32.partialorder %v518_v31, 0.0 }
 0x1a9   : > { %v357_v25 = vmax.f32 %v356_v24, 0.0 }
 0x1ab   : > { %671 = vrsqrt.f32 %v357_v25  ;;  %vm360_vm2 = vcmp.eq.f32.partialorder %v357_v25, inf  ;;  %v363_v28 = vand.u32 2147483648, %v357_v25  ;;  %vm362_vm3 = vcmp.eq.f32.partialorder %v357_v25, 0.0 }
 0x1b8   : > { %v672_v26 = vpop.eup %671 }
 0x1b9   : > { %v359_v27 = vmul.f32 %v672_v26, %v357_v25 }
 0x1bb   : > { %v361_v29 = vsel %vm360_vm2, %v357_v25, %v359_v27 }
 0x1bc   : > { %v364_v30 = vsel %vm362_vm3, %v363_v28, %v361_v29 }
 0x1bd   : > { %v366_v33 = vmul.f32 0.64421767, %v364_v30 }
 0x1bf   : > { %v367_v34 = vsub.f32 %v365_v32, %v366_v33 }
 0x1c1   : > { %v371_v36 = vsel %vm369_vm4, %v367_v34, %v519_v35 }
 0x1c2   : > { %v372_v37 = vsel %vm351_vm1, %v371_v36, %v336_v17 }
 0x1c3   : > { %v373_v38 = vmul.f32 30.0, %v372_v37 }
 0x1c5   : > { %374 = vst [vmem:[%s227_s25] sm:$0xff] %v373_v38 }
 0x1c6   : > { %714 = shalt.err (!%p711_p13)
}
 0x1c7   : > { %s715_s26 = scalar_lea.hbm %s389_s6, 128  ;;  %s719_s21 = scalar_lea.hbm %s1055_s3, 512 }
 0x1c8   : > { %p716_p0 = scmp.ne.s32.totalorder %s389_s6, %s715_s26  ;;  %p720_p5 = scmp.lt.s32.totalorder %s389_s6, %s1055_s3 }
 0x1c9   : > { %p721_p4 = scmp.lt.s32.totalorder %s719_s21, %s715_s26 }
 0x1ca   : > { %p717_p3 = pnand %p716_p0, %p933_p12 }
 0x1cb   : > { %p722_p7 = por %p721_p4, %p720_p5 }
 0x1cc   : > { %p718_p1 = pneg %p717_p3 }
 0x1ce   : > { %p723_p6 = pnand %p722_p7, %p718_p1 }
 0x1d0   : > { %726 = shalt.err (!%p723_p6)
}
 0x1d1   : > { %556 = dma.vmem_to_hbm [thread:$0]  (%p933_p12), %s392_s4, 128, %s389_s6, %s376_s27  }
 0x1d2 PF: > { %p567_p8 = scmp.ge.s32.totalorder %s821_s22, 2  ;;  %s403_s29 = sand.u32 1, %s781_s12  }
 0x1d3   : > { %s404_s25 = scalar_lea.sflag [#allocation4], %s403_s29 }
 0x1d4   : > { %p563_p9 = pnand %p567_p8, %p946_p2 }
 0x1d6   : > { %p564_p10 = pneg %p563_p9 }
 0x1d8   : > { %776 = dma.done.wait (%p564_p10), %s404_s25, 128  }
 0x1d9   : > { %778 = vsyncadd (%p564_p10), %s404_s25, 4294967168  ;;  %s19_s22 = sadd.s32 1, %s821_s22   ;;  %s1069_s18 = sld [smem:[#allocation8_spill]] }
 0x1da   : > { %p16_p11 = scmp.ge.s32.totalorder %s19_s22, 6   ;;  %s1070_s19 = sld [smem:[#allocation9_spill]] }
 0x1db   : > { %s1071_s20 = sld [smem:[#allocation10_spill]]  ;;  %s1073_s12 = smov %s785_s13 }
 0x1dc   : > { %s1072_s21 = sld [smem:[#allocation11_spill]]  ;;  %s1074_s13 = smov %s789_s14 }
 0x1dd   : > { %s1075_s14 = smov %s941_s9  ;;  %s1076_s15 = smov %s797_s16 }
 0x1de   : > { %s1077_s16 = smov %s801_s17  ;;  %s1078_s17 = smov %s938_s8 }
 0x1df   :  { %18 = sbr.rel (!%p16_p11) target bundleno = 9 (0x9), region = 83 }
 0x1e4   :  { %409 = vsyncpa [#allocation3], 1 }
 0x1e5   :  { %411 = vsyncpa [#allocation3 + $0x1], 1 }
 0x1e6   :  { %412 = vsyncpa [#allocation4], 1 }
 0x1e7   :  { %414 = vsyncpa [#allocation4 + $0x1], 1 }

</bundles_post_ra>
